<compile_context>
chip_gen: v5e
topology: v5e:2x2
jax: 0.10.0
libtpu: 0.0.40
codegen_flags: <defaults>
</compile_context>

<pallas_src>
import numpy as np
import jax
import jax.numpy as jnp
from jax import lax
from jax.experimental import pallas as pl
from jax.experimental.pallas import tpu as pltpu

_EPS = 1e-12            # torch.nn.functional.normalize default eps
_EPS_SQ = _EPS * _EPS   # clamp on sum-of-squares (still a normal f32)


# ----------------------------------------------------------------------------
# small helpers
# ----------------------------------------------------------------------------
def _cdiv(a, b):
    return -(-a // b)


def _round_up(a, b):
    return _cdiv(a, b) * b


def _chip_params():
    """Generation-aware tiling knobs (with safe fallbacks)."""
    phys_vmem = 128 << 20
    try:
        info = pltpu.get_tpu_info()
        phys_vmem = int(getattr(info, "vmem_capacity_bytes", phys_vmem))
    except Exception:
        pass
    if phys_vmem <= (64 << 20):
        # v7x-like: 2 TensorCores share the grid, only 64 MiB VMEM per TC.
        return dict(budget=4 << 20, min_steps=2, phys_vmem=phys_vmem)
    # v5e/v6e-like: single TensorCore, 128 MiB VMEM.
    return dict(budget=6 << 20, min_steps=1, phys_vmem=phys_vmem)


def _vmem_limit(block_bytes, phys_vmem):
    """Scoped-VMEM request: 2x double-buffered (in + out) + headroom, capped
    well below the physical capacity so the compiler keeps its own scratch."""
    need = 4 * block_bytes + (2 << 20)
    cap = max(16 << 20, phys_vmem - (16 << 20))
    return int(min(max(need, 8 << 20), cap))


# ----------------------------------------------------------------------------
# kernels
# ----------------------------------------------------------------------------
def _l2norm_sublane_kernel(x_ref, o_ref):
    # Block: (bp, C, tile); reduction over axis 1 (full extent -> never ragged).
    xf = x_ref[...].astype(jnp.float32)
    sumsq = jnp.sum(xf * xf, axis=1, keepdims=True)          # (bp, 1, tile)
    scale = lax.rsqrt(jnp.maximum(sumsq, _EPS_SQ))            # EUP slot
    o_ref[...] = (xf * scale).astype(o_ref.dtype)             # f32 mul, one cast


def _l2norm_lane_kernel(x_ref, o_ref):
    # Block: (block_rows, C); reduction over the lane axis (full extent).
    xf = x_ref[...].astype(jnp.float32)
    sumsq = jnp.sum(xf * xf, axis=-1, keepdims=True)          # (block_rows, 1)
    scale = lax.rsqrt(jnp.maximum(sumsq, _EPS_SQ))
    o_ref[...] = (xf * scale).astype(o_ref.dtype)


# ----------------------------------------------------------------------------
# tiling policy
# ----------------------------------------------------------------------------
def _plan_post_tiles(pre, c, post, itemsize, budget, min_steps):
    """Pick (bp, tile) so bp*C*tile*itemsize ~= budget, tile a 128-multiple
    (or the full extent when post <= 128), and the grid has >= min_steps."""
    if post <= 128:
        tile = post
    else:
        lane_budget = max(128, (budget // max(1, c * itemsize)) // 128 * 128)
        tile = int(min(_round_up(post, 128), lane_budget))
    bp = max(1, budget // max(1, c * tile * itemsize))
    bp = int(min(bp, pre))

    def steps(b, t):
        return _cdiv(pre, b) * _cdiv(post, t)

    while bp > 1 and steps(bp, tile) < min_steps:
        bp = max(1, bp // 2)
    while tile > 128 and steps(bp, tile) < min_steps:
        tile = max(128, ((tile // 2) // 128) * 128)
    return bp, tile


def _plan_row_tile(rows, c, itemsize, budget, min_steps):
    """Budget-driven, sublane-aligned row-block size for the last-axis path."""
    sub = max(8, 32 // max(1, itemsize))     # 8 for f32, 16 for bf16, 32 for i8
    if rows <= sub:
        return rows
    br = max(sub, (budget // max(1, c * itemsize)) // sub * sub)
    br = int(min(br, _round_up(rows, sub)))
    while br > sub and _cdiv(rows, br) < min_steps:
        br = max(sub, ((br // 2) // sub) * sub)
    return br


# ----------------------------------------------------------------------------
# wrapper
# ----------------------------------------------------------------------------
def l2_normalize(x, dim=1):
    """Pallas implementation of F.normalize(x, p=2, dim=dim)."""
    ndim = x.ndim
    dim = dim % ndim
    shape = x.shape
    C = shape[dim]
    pre = int(np.prod(shape[:dim])) if dim > 0 else 1
    post = int(np.prod(shape[dim + 1:])) if dim + 1 < ndim else 1
    itemsize = jnp.dtype(x.dtype).itemsize
    numel = int(np.prod(shape))
    params = _chip_params()
    cost = pl.CostEstimate(
        flops=3 * numel,
        transcendentals=max(1, numel // max(1, C)),   # one rsqrt per vector
        bytes_accessed=2 * numel * itemsize)

    if post > 1:
        # Interior normalization axis: reduce over C (sublane side), lanes
        # carry the trailing spatial extent (lane-dense, 128-multiple stores).
        x3d = x.reshape(pre, C, post)
        bp, tile = _plan_post_tiles(pre, C, post, itemsize,
                                    params["budget"], params["min_steps"])
        grid = (_cdiv(pre, bp), _cdiv(post, tile))
        block_bytes = bp * C * tile * itemsize
        out3d = pl.pallas_call(
            _l2norm_sublane_kernel,
            out_shape=jax.ShapeDtypeStruct((pre, C, post), x.dtype),
            grid=grid,
            in_specs=[pl.BlockSpec((bp, C, tile), lambda n, j: (n, 0, j))],
            out_specs=pl.BlockSpec((bp, C, tile), lambda n, j: (n, 0, j)),
            compiler_params=pltpu.CompilerParams(
                dimension_semantics=("parallel", "parallel"),
                vmem_limit_bytes=_vmem_limit(block_bytes, params["phys_vmem"])),
            cost_estimate=cost,
        )(x3d)
        return out3d.reshape(shape)

    # Normalization axis is (effectively) the last one: reduce over lanes.
    rows = pre
    x2d = x.reshape(rows, C)
    br = _plan_row_tile(rows, C, itemsize, params["budget"], params["min_steps"])
    grid = (_cdiv(rows, br),)
    block_bytes = br * C * itemsize
    out2d = pl.pallas_call(
        _l2norm_lane_kernel,
        out_shape=jax.ShapeDtypeStruct((rows, C), x.dtype),
        grid=grid,
        in_specs=[pl.BlockSpec((br, C), lambda i: (i, 0))],
        out_specs=pl.BlockSpec((br, C), lambda i: (i, 0)),
        compiler_params=pltpu.CompilerParams(
            dimension_semantics=("parallel",),
            vmem_limit_bytes=_vmem_limit(block_bytes, params["phys_vmem"])),
        cost_estimate=cost,
    )(x2d)
    return out2d.reshape(shape)


class L2Norm:
    """JAX/Pallas equivalent of the PyTorch L2Norm module (no parameters)."""

    def __init__(self, dim=1):
        self.dim = dim

    def __call__(self, x):
        return l2_normalize(x, dim=self.dim)


if __name__ == "__main__":
    key = jax.random.PRNGKey(0)
    # NCHW input: batch=2, channels=4, spatial=16x16; normalize over channels.
    x = jax.random.normal(key, (2, 4, 16, 16), dtype=jnp.float32)
    model = L2Norm(dim=1)
    y = jax.block_until_ready(model(x))

    ref = x / jnp.maximum(
        jnp.sqrt(jnp.sum(x * x, axis=1, keepdims=True)), _EPS)
    assert y.shape == x.shape and y.dtype == x.dtype
    np.testing.assert_allclose(np.asarray(y), np.asarray(ref),
                               rtol=1e-5, atol=1e-6)

    # Also exercise the last-axis (lane-reduction) path.
    x2 = jax.random.normal(jax.random.PRNGKey(1), (2, 8, 32), dtype=jnp.float32)
    y2 = jax.block_until_ready(L2Norm(dim=-1)(x2))
    ref2 = x2 / jnp.maximum(
        jnp.sqrt(jnp.sum(x2 * x2, axis=-1, keepdims=True)), _EPS)
    np.testing.assert_allclose(np.asarray(y2), np.asarray(ref2),
                               rtol=1e-5, atol=1e-6)

    print("KERNEL_OK")
</pallas_src>

<mosaic_0001>
module attributes {stable_mosaic.version = 11 : i64} {
  func.func @_l2norm_sublane_kernel(%arg0: i32, %arg1: i32, %arg2: memref<2x4x256xf32, #tpu.memory_space<vmem>>, %arg3: memref<2x4x256xf32, #tpu.memory_space<vmem>>) attributes {dimension_semantics = [#tpu.dimension_semantics<parallel>, #tpu.dimension_semantics<parallel>], iteration_bounds = array<i64: 1, 1>, scalar_prefetch = 0 : i64, scratch_operands = 0 : i64, tpu.core_type = #tpu.core_type<tc>, window_params = [{transform_indices = @transform_0, window_bounds = array<i64: 2, 4, 256>}, {transform_indices = @transform_1, window_bounds = array<i64: 2, 4, 256>}]} {
    %c0 = arith.constant 0 : index
    %c0_0 = arith.constant 0 : index
    %c0_1 = arith.constant 0 : index
    %0 = vector.load %arg2[%c0, %c0_0, %c0_1] : memref<2x4x256xf32, #tpu.memory_space<vmem>>, vector<2x4x256xf32>
    %1 = arith.mulf %0, %0 : vector<2x4x256xf32>
    %cst = arith.constant dense<0.000000e+00> : vector<2x256xf32>
    %2 = vector.multi_reduction <add>, %1, %cst [1] : vector<2x4x256xf32> to vector<2x256xf32>
    %3 = vector.shape_cast %2 : vector<2x256xf32> to vector<2x1x256xf32>
    %cst_2 = arith.constant 1.000000e-24 : f32
    %4 = vector.broadcast %cst_2 : f32 to vector<2x1x256xf32>
    %5 = arith.maximumf %3, %4 : vector<2x1x256xf32>
    %6 = math.rsqrt %5 : vector<2x1x256xf32>
    %7 = vector.broadcast %6 : vector<2x1x256xf32> to vector<2x4x256xf32>
    %8 = arith.mulf %0, %7 : vector<2x4x256xf32>
    %c0_3 = arith.constant 0 : index
    %c0_4 = arith.constant 0 : index
    %c0_5 = arith.constant 0 : index
    %9 = vector.load %arg3[%c0_3, %c0_4, %c0_5] : memref<2x4x256xf32, #tpu.memory_space<vmem>>, vector<2x4x256xf32>
    tpu.vector_store %arg3[%c0_3, %c0_4, %c0_5], %8 {strides = array<i32>} : memref<2x4x256xf32, #tpu.memory_space<vmem>>, vector<2x4x256xf32>,
    return
  }
  func.func @transform_0(%arg0: i32, %arg1: i32) -> (i32, i32, i32) {
    %c0_i32 = arith.constant 0 : i32
    %c0_i32_0 = arith.constant 0 : i32
    return %arg0, %c0_i32, %arg1 : i32, i32, i32
  }
  func.func @transform_1(%arg0: i32, %arg1: i32) -> (i32, i32, i32) {
    %c0_i32 = arith.constant 0 : i32
    %c0_i32_0 = arith.constant 0 : i32
    return %arg0, %c0_i32, %arg1 : i32, i32, i32
  }
}

</mosaic_0001>

<bundles_post_ra>
// kernel: tpu_custom_call.1
= control target key start
LH: loop header
LB: loop body
LE: loop exit
PB: predicated region body
PF: predicated region fallthrough
CT: control target
= control target key end

     0   :  { %6 = vsyncpa [#allocation3], 0  ;;  %s254_s0 = inlined_call_operand.hbm [shape: f32[2,4,256], index: 0, kind: input, shape index: {}]   ;;  %s255_s1 = inlined_call_operand.hbm [shape: f32[2,4,256], index: 1, kind: output, shape index: {}]  }
   0x1   :  { %7 = vsyncpa [#allocation4], 0  ;;  %s12_s8 = sshll.u32 %s254_s0, 4  ;;  %s212_s9 = smov [#allocation2]   ;;  %s13_s8 = int_to_ptr.hbm [resolvable:$true] %s12_s8 }
   0x2   :  { %s14_s10 = sshll.u32 %s212_s9, 4  ;;  %s213_s11 = smov 128   ;;  %s15_s10 = int_to_ptr.vmem [resolvable:$true] %s14_s10 }
   0x3   :  { %s214_s12 = smov 8  }
   0x4   :  { %20 = dma.hbm_to_vmem [thread:$0]  %s13_s8, 256, %s15_s10, [#allocation3], %s213_s11, %s213_s11, %s214_s12  }
   0x5   :  { %208 = dma.done.wait [#allocation3], 256  }
   0x6   :  { %209 = vsyncadd [#allocation3], 4294967040  ;;  %v232_v0 = vld [vmem:[#allocation2] sm:$0xff]  ;;  %v234_v1 = vld [vmem:[#allocation2 + $0x8] sm:$0xff]  ;;  %vm42_vm0 = vcmask 1043456   ;;  %s215_s0 = smov [#allocation5]  }
   0x7   :  { %v27_v2 = vmul.f32 %v232_v0, %v232_v0  ;;  %v28_v3 = vmul.f32 %v234_v1, %v234_v1  ;;  %s133_s13 = sshll.u32 %s215_s0, 4  ;;  %s135_s16 = sshll.u32 %s255_s1, 4  ;;  %s134_s13 = int_to_ptr.vmem [resolvable:$true] %s133_s13  ;;  %s136_s16 = int_to_ptr.hbm [resolvable:$true] %s135_s16 }
   0x9   :  { %31 = vst [vmem:[#allocation1] ss:$2 sm:$0xff] %v27_v2 }
   0xa   :  { %35 = vst [vmem:[#allocation1 + $0x10] ss:$2 sm:$0xff] %v28_v3 }
  0x10   :  { %v32_v4 = vld.sshfl [vmem:[#allocation1] sm:$0xff pattern:$0x75316420]  ;;  %v33_v5 = vld.sshfl [vmem:[#allocation1 + $0x8] sm:$0xff pattern:$0x75316420] }
  0x11   :  { %v43_v6 = vsel %vm42_vm0, %v32_v4, 0.0  ;;  %v50_v7 = vsel %vm42_vm0, %v33_v5, 0.0  ;;  %v36_v8 = vld.sshfl [vmem:[#allocation1 + $0x10] sm:$0xff pattern:$0x75316420] }
  0x12   :  { %v44_v9 = vrot.slane %v43_v6, 4  ;;  %v51_v10 = vrot.slane %v50_v7, 4  ;;  %v37_v11 = vld.sshfl [vmem:[#allocation1 + $0x18] sm:$0xff pattern:$0x75316420]  ;;  %v57_v12 = vsel %vm42_vm0, %v36_v8, 0.0 }
  0x13   :  { %v58_v13 = vrot.slane %v57_v12, 4  ;;  %v64_v14 = vsel %vm42_vm0, %v37_v11, 0.0 }
  0x14   :  { %v45_v15 = vadd.f32 %v44_v9, %v43_v6  ;;  %v52_v16 = vadd.f32 %v51_v10, %v50_v7  ;;  %v65_v17 = vrot.slane %v64_v14, 4 }
  0x15   :  { %v59_v18 = vadd.f32 %v58_v13, %v57_v12 }
  0x16   :  { %v46_v19 = vrot.slane %v45_v15, 2  ;;  %v53_v20 = vrot.slane %v52_v16, 2  ;;  %v66_v21 = vadd.f32 %v65_v17, %v64_v14 }
  0x17   :  { %v60_v22 = vrot.slane %v59_v18, 2 }
  0x18   :  { %v47_v23 = vadd.f32 %v46_v19, %v45_v15  ;;  %v54_v24 = vadd.f32 %v53_v20, %v52_v16  ;;  %v67_v25 = vrot.slane %v66_v21, 2 }
  0x19   :  { %v61_v26 = vadd.f32 %v60_v22, %v59_v18 }
  0x1a   :  { %v48_v27 = vrot.slane %v47_v23, 1  ;;  %v55_v28 = vrot.slane %v54_v24, 1  ;;  %v68_v29 = vadd.f32 %v67_v25, %v66_v21 }
  0x1b   :  { %v62_v30 = vrot.slane %v61_v26, 1 }
  0x1c   :  { %v49_v31 = vadd.f32 %v48_v27, %v47_v23  ;;  %v56_v32 = vadd.f32 %v55_v28, %v54_v24  ;;  %v69_v33 = vrot.slane %v68_v29, 1 }
  0x1d   :  { %v63_v34 = vadd.f32 %v62_v30, %v61_v26 }
  0x1e   :  { %v71_v35 = vmax.f32 %v49_v31, 1e-24  ;;  %v72_v36 = vmax.f32 %v56_v32, 1e-24  ;;  %v70_v37 = vadd.f32 %v69_v33, %v68_v29 }
  0x1f   :  { %v73_v38 = vmax.f32 %v63_v34, 1e-24 }
  0x20   :  { %152 = vrsqrt.f32 %v71_v35  ;;  %v74_v39 = vmax.f32 %v70_v37, 1e-24  ;;  %vm91_vm3 = vweird.f32 %v72_v36  ;;  %vm81_vm5 = vweird.f32 %v71_v35 }
  0x21   :  { %154 = vrsqrt.f32 %v72_v36  ;;  %vm101_vm11 = vweird.f32 %v73_v38 }
  0x22   :  { %156 = vrsqrt.f32 %v73_v38  ;;  %vm111_vm7 = vweird.f32 %v74_v39 }
  0x23   :  { %158 = vrsqrt.f32 %v74_v39 }
  0x26   :  { %v153_v40 = vpop.eup %152 }
  0x27   :  { %v155_v41 = vpop.eup %154  ;;  %v76_v42 = vmul.f32 %v153_v40, %v71_v35  ;;  %vm82_vm2 = vweird.f32 %v153_v40 }
  0x28   :  { %v157_v43 = vpop.eup %156  ;;  %v86_v44 = vmul.f32 %v155_v41, %v72_v36  ;;  %vm92_vm1 = vweird.f32 %v155_v41  ;;  %vm83_vm8 = vmor %vm81_vm5, %vm82_vm2 }
  0x29   :  { %v159_v45 = vpop.eup %158  ;;  %v77_v46 = vmul.f32 %v153_v40, %v76_v42  ;;  %v96_v47 = vmul.f32 %v157_v43, %v73_v38  ;;  %vm93_vm6 = vmor %vm91_vm3, %vm92_vm1  ;;  %vm102_vm9 = vweird.f32 %v157_v43 }
  0x2a   :  { %v87_v48 = vmul.f32 %v155_v41, %v86_v44  ;;  %v106_v49 = vmul.f32 %v159_v45, %v74_v39  ;;  %vm112_vm4 = vweird.f32 %v159_v45  ;;  %vm103_vm12 = vmor %vm101_vm11, %vm102_vm9 }
  0x2b   :  { %v78_v50 = vmul.f32 0.5, %v77_v46  ;;  %v97_v51 = vmul.f32 %v157_v43, %v96_v47  ;;  %vm113_vm10 = vmor %vm111_vm7, %vm112_vm4 }
  0x2c   :  { %v88_v52 = vmul.f32 0.5, %v87_v48  ;;  %v107_v53 = vmul.f32 %v159_v45, %v106_v49 }
  0x2d   :  { %v79_v54 = vsub.f32 1.5, %v78_v50  ;;  %v98_v55 = vmul.f32 0.5, %v97_v51 }
  0x2e   :  { %v89_v56 = vsub.f32 1.5, %v88_v52  ;;  %v108_v57 = vmul.f32 0.5, %v107_v53 }
  0x2f   :  { %v99_v58 = vsub.f32 1.5, %v98_v55  ;;  %v80_v59 = vmul.f32 %v153_v40, %v79_v54 }
  0x30   :  { %v90_v60 = vmul.f32 %v155_v41, %v89_v56  ;;  %v109_v61 = vsub.f32 1.5, %v108_v57 }
  0x31   :  { %v100_v63 = vmul.f32 %v157_v43, %v99_v58  ;;  %v84_v4 = vsel %vm83_vm8, %v153_v40, %v80_v59 }
  0x32   :  { %v94_v62 = vsel %vm93_vm6, %v155_v41, %v90_v60  ;;  %v110_v2 = vmul.f32 %v159_v45, %v109_v61 }
  0x33   :  { %v119_v3 = vrot.slane %v94_v62, 4  ;;  %v104_v9 = vsel %vm103_vm12, %v157_v43, %v100_v63 }
  0x34   :  { %v114_v5 = vsel %vm113_vm10, %v159_v45, %v110_v2 }
  0x35   :  { %v121_v6 = vsel %vm42_vm0, %v84_v4, %v119_v3  ;;  %v120_v7 = vrot.slane %v114_v5, 4 }
  0x36   :  { %v125_v8 = vmul.f32 %v121_v6, %v232_v0 }
  0x37   :  { %v122_v10 = vsel %vm42_vm0, %v104_v9, %v120_v7 }
  0x38   :  { %127 = vst [vmem:[#allocation5] sm:$0xff] %v125_v8  ;;  %v126_v11 = vmul.f32 %v122_v10, %v234_v1 }
  0x3a   :  { %128 = vst [vmem:[#allocation5 + $0x8] sm:$0xff] %v126_v11 }
  0x3b   :  { %141 = dma.vmem_to_hbm [thread:$0]  %s134_s13, 256, %s136_s16, [#allocation4], %s213_s11, %s213_s11, %s214_s12  }
  0x3c   :  { %210 = dma.done.wait [#allocation4], 256  }
  0x3d   :  { %211 = vsyncadd [#allocation4], 4294967040 }
  0x3e   :  { %146 = vsyncpa [#allocation3], 1 }
  0x3f   :  { %147 = vsyncpa [#allocation4], 1 }

</bundles_post_ra>
